<compile_context>
chip_gen: v5e
topology: v5e:2x2
jax: 0.10.0
libtpu: 0.0.40
codegen_flags: <defaults>
</compile_context>

<pallas_src>
import jax
import jax.numpy as jnp
from jax import lax
from jax.experimental import pallas as pl
from jax.experimental.pallas import tpu as pltpu


# ---------------------------------------------------------------------------
# Kernel 1: fused gumbel-softmax (hard, forward value) + decoded token indices
# ---------------------------------------------------------------------------
def _choose_tiles(B, S, V, in_bytes, out_bytes, budget_bytes):
    """Byte-budgeted (B_tile, S_tile) selection.

    Per-element footprint per pipeline step:
      2x double-buffered input  (in_bytes)
    + 2x double-buffered output (out_bytes)
    + ~3 live f32 temporaries   (perturbed logits / compares / hash)    """
    per_elem = 2 * (in_bytes + out_bytes) + 12
    max_rows = max(1, budget_bytes // (per_elem * V))   # rows == B_tile * S_tile

    # S_tile: divisor of S, multiple of 16 (bf16 sublane packing) or == S.
    s_cands = [d for d in range(1, S + 1)
               if S % d == 0 and (d % 16 == 0 or d == S)]
    fitting = [d for d in s_cands if d <= max_rows]
    s_tile = max(fitting) if fitting else min(s_cands)

    # Small-vocab / short-seq case: fold batch into the block so tiles stay
    # multi-MiB (sub-MiB tiles sit in the per-step-overhead regime).
    b_tile = 1
    if s_tile == S:
        b_cands = [d for d in range(1, B + 1) if B % d == 0 and d * S <= max_rows]
        if b_cands:
            b_tile = max(b_cands)
    return b_tile, s_tile


def gumbel_decode(logits, tau, seed, *, mask_dtype=jnp.bfloat16,
                  vmem_budget_bytes=24 << 20, vmem_limit_bytes=48 << 20):
    """logits: (B, S, V) f32 or bf16.  tau: python float (forward value of the
    hard gumbel-softmax is invariant to tau, so it is accepted but unused).
    seed: (1,) int32.

    Returns (token_mask (B,S,V) mask_dtype, decoded_tokens (B,S) f32)."""
    del tau  # argmax(logits + g) is invariant to the positive 1/tau scale
    B, S, V = logits.shape
    in_bytes = jnp.dtype(logits.dtype).itemsize
    out_bytes = jnp.dtype(mask_dtype).itemsize
    B_tile, S_tile = _choose_tiles(B, S, V, in_bytes, out_bytes, vmem_budget_bytes)

    def kernel(seed_ref, logits_ref, mask_ref, dec_ref):
        x = logits_ref[...].astype(jnp.float32)            # (Bt, St, V)
        Bt, St, Vv = x.shape
        shape = (Bt, St, Vv)

        # --- portable counter-based PRNG (lowbias32 hash of a global counter).
        # Deterministic per element regardless of tiling; pure VPU int ops so it
        # lowers under Mosaic *and* interpret mode (no pltpu.prng_* needed).
        b_ix = lax.broadcasted_iota(jnp.uint32, shape, 0) + \
            (pl.program_id(0) * Bt).astype(jnp.uint32)
        s_ix = lax.broadcasted_iota(jnp.uint32, shape, 1) + \
            (pl.program_id(1) * St).astype(jnp.uint32)
        v_ix = lax.broadcasted_iota(jnp.uint32, shape, 2)
        ctr = (b_ix * jnp.uint32(S) + s_ix) * jnp.uint32(Vv) + v_ix
        h = ctr ^ (seed_ref[0].astype(jnp.uint32) * jnp.uint32(0x9E3779B9))
        h = h ^ (h >> 16)
        h = h * jnp.uint32(0x7FEB352D)
        h = h ^ (h >> 15)
        h = h * jnp.uint32(0x846CA68B)
        h = h ^ (h >> 16)

        # bits -> uniform (0,1) -> Gumbel(0,1) = -log(-log(u))   (EUP logs)
        u = ((h >> 8).astype(jnp.float32) + 0.5) * (1.0 / 16777216.0)
        g = -jnp.log(-jnp.log(u))

        # hard one-hot at the first argmax of the perturbed logits
        pert = x + g
        m = jnp.max(pert, axis=-1, keepdims=True)
        iota_v = lax.broadcasted_iota(jnp.int32, shape, 2)
        idx = jnp.min(jnp.where(pert == m, iota_v, Vv), axis=-1, keepdims=True)

        # forward value of hard gumbel_softmax is the one-hot mask (0/1 exact)
        mask_ref[...] = (iota_v == idx).astype(mask_ref.dtype)
        # decoded_tokens = (mask * indices).sum(-1) == argmax index
        dec_ref[...] = idx.astype(jnp.float32)

    mask, dec = pl.pallas_call(
        kernel,
        out_shape=(
            jax.ShapeDtypeStruct((B, S, V), mask_dtype),
            jax.ShapeDtypeStruct((B, S, 1), jnp.float32),
        ),
        grid_spec=pltpu.PrefetchScalarGridSpec(
            num_scalar_prefetch=1,                           # seed -> SMEM
            grid=(B // B_tile, S // S_tile),
            in_specs=[pl.BlockSpec((B_tile, S_tile, V),
                                   lambda b, s, sref: (b, s, 0))],
            out_specs=[
                pl.BlockSpec((B_tile, S_tile, V), lambda b, s, sref: (b, s, 0)),
                pl.BlockSpec((B_tile, S_tile, 1), lambda b, s, sref: (b, s, 0)),
            ],
        ),
        compiler_params=pltpu.CompilerParams(
            dimension_semantics=("parallel", "parallel"),    # both TCs on v7x
            vmem_limit_bytes=vmem_limit_bytes),
        # NOTE: on v7x at real vocab (small S_tile) pipeline_mode=pl.Buffered(3)
        # on the logits in_spec can hide per-step DMA setup; omitted here for
        # cross-generation simplicity.
    )(seed, logits)
    return mask, dec[..., 0]                                 # (B,S,V), (B,S) f32


# ---------------------------------------------------------------------------
# Kernel 2: text_proj -> L2 normalize -> classifier -> cross-entropy + top-1
# ---------------------------------------------------------------------------
def head_kernel(h_ref, wp_ref, bp_ref, wc_ref, bc_ref, lab_ref,
                logit_ref, loss_ref, corr_ref):
    h = h_ref[...]                                           # (B, H)
    # text_proj:  t = h @ Wp + bp     (Wp stored as (H, E) == torch W.T)
    t = jnp.dot(h, wp_ref[...], preferred_element_type=jnp.float32) + bp_ref[...]
    # F.normalize(t, dim=-1): x / max(||x||_2, 1e-12)  ==  x * rsqrt(max(ss, 1e-24))
    ss = jnp.sum(t * t, axis=-1, keepdims=True)
    feat = t * lax.rsqrt(jnp.maximum(ss, 1e-24))             # EUP rsqrt, no divide
    # classifier: logit = feat @ Wc + bc   (Wc stored as (E, C) == torch W.T)
    logit = jnp.dot(feat, wc_ref[...], preferred_element_type=jnp.float32) + bc_ref[...]
    logit_ref[...] = logit

    B, C = logit.shape
    y = lab_ref[...]                                         # (B, 1) int32 labels
    iota_c = lax.broadcasted_iota(jnp.int32, (B, C), 1)
    onehot = (iota_c == y).astype(jnp.float32)

    # cross entropy (per-sample): lse - logit[label]
    m = jnp.max(logit, axis=-1, keepdims=True)
    lse = jnp.log(jnp.sum(jnp.exp(logit - m), axis=-1, keepdims=True)) + m
    loss_ref[...] = lse - jnp.sum(onehot * logit, axis=-1, keepdims=True)

    # top-1 accuracy: first argmax index vs int label
    pred = jnp.min(jnp.where(logit == m, iota_c, C), axis=-1, keepdims=True)
    corr_ref[...] = (pred == y).astype(jnp.float32)


def classify_head(cls_hidden, w_proj, b_proj, w_cls, b_cls, class_label):
    B, H = cls_hidden.shape
    E = w_proj.shape[1]
    C = w_cls.shape[1]
    labels = class_label.reshape(B, 1).astype(jnp.int32)
    full = lambda *shape: pl.BlockSpec(shape, lambda i: tuple(0 for _ in shape))
    # NOTE: at these tiny shapes the launch overhead dominates; kept as a single
    # grid=(1,) call with everything resident in VMEM.  If H/E/B grow to real
    # BERT sizes, cast weights to bf16 and tile B over a "parallel" grid axis.
    logit, loss, corr = pl.pallas_call(
        head_kernel,
        out_shape=(
            jax.ShapeDtypeStruct((B, C), jnp.float32),
            jax.ShapeDtypeStruct((B, 1), jnp.float32),
            jax.ShapeDtypeStruct((B, 1), jnp.float32),
        ),
        grid_spec=pltpu.PrefetchScalarGridSpec(
            num_scalar_prefetch=0,
            grid=(1,),
            in_specs=[
                full(B, H), full(H, E), full(1, E),
                full(E, C), full(1, C), full(B, 1),
            ],
            out_specs=[full(B, C), full(B, 1), full(B, 1)],
        ),
        compiler_params=pltpu.CompilerParams(dimension_semantics=("arbitrary",)),
    )(cls_hidden, w_proj, b_proj, w_cls, b_cls, labels)
    return logit, loss, corr


# ---------------------------------------------------------------------------
# Forward glue (mirrors LlavaExbm.forward tail)
# ---------------------------------------------------------------------------
def llava_exbm_forward(decoder_logits, cls_hidden, class_label, params, tau, seed):
    B = decoder_logits.shape[0]

    token_mask, decoded_tokens = gumbel_decode(decoder_logits, tau, seed)
    # TODO(synk): the decoded tokens would be fed to the BERT text_encoder here;
    # that encoder is not translatable, so `cls_hidden` stands in for
    # caption_text_output.last_hidden_state[:, 0, :].

    logit, loss_per_sample, correct = classify_head(
        cls_hidden, params["w_proj"], params["b_proj"],
        params["w_cls"], params["b_cls"], class_label,
    )
    loss_cls = jnp.mean(loss_per_sample)
    acc = jnp.sum(correct) * (100.0 / B)
    return loss_cls, acc, logit, token_mask, decoded_tokens


if __name__ == "__main__":
    # small shapes consistent with the module's forward
    B, S, V = 4, 8, 128      # batch, decoded seq len, (tiny) vocab
    H, E, C = 32, 32, 8      # bert hidden, embed_dim, num_classes
    tau = 1.0

    key = jax.random.PRNGKey(0)
    k_logits, k_hidden, k_wp, k_bp, k_wc, k_lbl = jax.random.split(key, 6)

    # synthetic decoder logits and BERT CLS hidden state (stand-ins, see TODOs)
    decoder_logits = jax.random.normal(k_logits, (B, S, V), dtype=jnp.float32)
    cls_hidden = jax.random.normal(k_hidden, (B, H), dtype=jnp.float32)
    class_label = jax.random.randint(k_lbl, (B,), 0, C, dtype=jnp.int32)

    # deterministic parameter init (shapes from __init__):
    #   text_proj:  Linear(text_width=H, embed_dim=E)
    #   classifier: Linear(E, num_classes=C), weight ~ N(0, 0.01), bias = 0
    params = {
        "w_proj": (jax.random.normal(k_wp, (H, E), dtype=jnp.float32)
                   * (1.0 / jnp.sqrt(H))),
        "b_proj": (jax.random.normal(k_bp, (1, E), dtype=jnp.float32)
                   * (1.0 / jnp.sqrt(H))),
        "w_cls": jax.random.normal(k_wc, (E, C), dtype=jnp.float32) * 0.01,
        "b_cls": jnp.zeros((1, C), dtype=jnp.float32),
    }

    # seed for the in-kernel counter PRNG (replaces the HBM gumbel-noise tensor)
    seed = jnp.asarray([12345], dtype=jnp.int32)

    loss_cls, acc, logit, token_mask, decoded_tokens = llava_exbm_forward(
        decoder_logits, cls_hidden, class_label, params, tau, seed)

    jax.block_until_ready((loss_cls, acc, logit, token_mask, decoded_tokens))

    # --- light sanity checks -------------------------------------------------
    assert logit.shape == (B, C)
    assert token_mask.shape == (B, S, V)
    assert token_mask.dtype == jnp.bfloat16
    assert decoded_tokens.shape == (B, S)
    # each row of the mask is a one-hot (exactly one 1)
    assert bool(jnp.all(jnp.sum(token_mask.astype(jnp.float32), axis=-1) == 1.0))
    assert bool(jnp.all((decoded_tokens >= 0) & (decoded_tokens < V)))
    # the mask's hot index must agree with decoded_tokens
    mask_idx = jnp.argmax(token_mask.astype(jnp.float32), axis=-1).astype(jnp.float32)
    assert bool(jnp.all(mask_idx == decoded_tokens))
    assert bool(jnp.isfinite(loss_cls))
    assert bool(jnp.isfinite(acc))

    # pure-JAX reference for the classifier head
    t_ref = cls_hidden @ params["w_proj"] + params["b_proj"]
    n_ref = t_ref / jnp.maximum(
        jnp.linalg.norm(t_ref, axis=-1, keepdims=True), 1e-12)
    logit_ref = n_ref @ params["w_cls"] + params["b_cls"]
    lse_ref = jax.scipy.special.logsumexp(logit_ref, axis=-1)
    loss_ref = jnp.mean(lse_ref - logit_ref[jnp.arange(B), class_label])
    acc_ref = jnp.sum(
        (jnp.argmax(logit_ref, axis=-1) == class_label).astype(jnp.float32)
    ) * (100.0 / B)
    assert bool(jnp.allclose(logit, logit_ref, atol=1e-4, rtol=1e-4))
    assert bool(jnp.allclose(loss_cls, loss_ref, atol=1e-4, rtol=1e-4))
    assert bool(jnp.allclose(acc, acc_ref, atol=1e-4))

    print("KERNEL_OK")
</pallas_src>

<mosaic_0001>
module attributes {stable_mosaic.version = 11 : i64} {
  func.func @kernel(%arg0: i32, %arg1: i32, %arg2: memref<1xi32, #tpu.memory_space<smem>>, %arg3: memref<4x8x128xf32, #tpu.memory_space<vmem>>, %arg4: memref<4x8x128xbf16, #tpu.memory_space<vmem>>, %arg5: memref<4x8x1xf32, #tpu.memory_space<vmem>>) attributes {dimension_semantics = [#tpu.dimension_semantics<parallel>, #tpu.dimension_semantics<parallel>], iteration_bounds = array<i64: 1, 1>, scalar_prefetch = 1 : i64, scratch_operands = 0 : i64, tpu.core_type = #tpu.core_type<tc>, window_params = [{transform_indices = @transform_0, window_bounds = array<i64: 4, 8, 128>}, {transform_indices = @transform_1, window_bounds = array<i64: 4, 8, 128>}, {transform_indices = @transform_2, window_bounds = array<i64: 4, 8, 1>}]} {
    %c0 = arith.constant 0 : index
    %c0_0 = arith.constant 0 : index
    %c0_1 = arith.constant 0 : index
    %0 = vector.load %arg3[%c0, %c0_0, %c0_1] : memref<4x8x128xf32, #tpu.memory_space<vmem>>, vector<4x8x128xf32>
    %1 = tpu.iota {dimensions = array<i32: 0>} : vector<4x8x128xi32>
    %c4_i32 = arith.constant 4 : i32
    %2 = arith.muli %arg0, %c4_i32 : i32
    %3 = vector.broadcast %2 : i32 to vector<4x8x128xi32>
    %4 = arith.addi %1, %3 : vector<4x8x128xi32>
    %5 = tpu.iota {dimensions = array<i32: 1>} : vector<4x8x128xi32>
    %c8_i32 = arith.constant 8 : i32
    %6 = arith.muli %arg1, %c8_i32 : i32
    %7 = vector.broadcast %6 : i32 to vector<4x8x128xi32>
    %8 = arith.addi %5, %7 : vector<4x8x128xi32>
    %9 = tpu.iota {dimensions = array<i32: 2>} : vector<4x8x128xi32>
    %c8_i32_2 = arith.constant 8 : i32
    %10 = vector.broadcast %c8_i32_2 : i32 to vector<4x8x128xi32>
    %11 = arith.muli %4, %10 : vector<4x8x128xi32>
    %12 = arith.addi %11, %8 : vector<4x8x128xi32>
    %c128_i32 = arith.constant 128 : i32
    %13 = vector.broadcast %c128_i32 : i32 to vector<4x8x128xi32>
    %14 = arith.muli %12, %13 : vector<4x8x128xi32>
    %15 = arith.addi %14, %9 : vector<4x8x128xi32>
    %c0_3 = arith.constant 0 : index
    %16 = memref.load %arg2[%c0_3] : memref<1xi32, #tpu.memory_space<smem>>
    %c-1640531527_i32 = arith.constant -1640531527 : i32
    %17 = arith.muli %16, %c-1640531527_i32 : i32
    %18 = vector.broadcast %17 : i32 to vector<4x8x128xi32>
    %19 = arith.xori %15, %18 : vector<4x8x128xi32>
    %c16_i32 = arith.constant 16 : i32
    %20 = vector.broadcast %c16_i32 : i32 to vector<4x8x128xi32>
    %21 = arith.shrui %19, %20 : vector<4x8x128xi32>
    %22 = arith.xori %19, %21 : vector<4x8x128xi32>
    %c2146121005_i32 = arith.constant 2146121005 : i32
    %23 = vector.broadcast %c2146121005_i32 : i32 to vector<4x8x128xi32>
    %24 = arith.muli %22, %23 : vector<4x8x128xi32>
    %c15_i32 = arith.constant 15 : i32
    %25 = vector.broadcast %c15_i32 : i32 to vector<4x8x128xi32>
    %26 = arith.shrui %24, %25 : vector<4x8x128xi32>
    %27 = arith.xori %24, %26 : vector<4x8x128xi32>
    %c-2073254261_i32 = arith.constant -2073254261 : i32
    %28 = vector.broadcast %c-2073254261_i32 : i32 to vector<4x8x128xi32>
    %29 = arith.muli %27, %28 : vector<4x8x128xi32>
    %c16_i32_4 = arith.constant 16 : i32
    %30 = vector.broadcast %c16_i32_4 : i32 to vector<4x8x128xi32>
    %31 = arith.shrui %29, %30 : vector<4x8x128xi32>
    %32 = arith.xori %29, %31 : vector<4x8x128xi32>
    %c8_i32_5 = arith.constant 8 : i32
    %33 = vector.broadcast %c8_i32_5 : i32 to vector<4x8x128xi32>
    %34 = arith.shrui %32, %33 : vector<4x8x128xi32>
    %35 = arith.uitofp %34 : vector<4x8x128xi32> to vector<4x8x128xf32>
    %cst = arith.constant 5.000000e-01 : f32
    %36 = vector.broadcast %cst : f32 to vector<4x8x128xf32>
    %37 = arith.addf %35, %36 : vector<4x8x128xf32>
    %cst_6 = arith.constant 5.96046448E-8 : f32
    %38 = vector.broadcast %cst_6 : f32 to vector<4x8x128xf32>
    %39 = arith.mulf %37, %38 : vector<4x8x128xf32>
    %40 = math.log %39 : vector<4x8x128xf32>
    %cst_7 = arith.constant 0.000000e+00 : f32
    %41 = vector.broadcast %cst_7 : f32 to vector<4x8x128xf32>
    %42 = arith.subf %41, %40 : vector<4x8x128xf32>
    %43 = math.log %42 : vector<4x8x128xf32>
    %cst_8 = arith.constant 0.000000e+00 : f32
    %44 = vector.broadcast %cst_8 : f32 to vector<4x8x128xf32>
    %45 = arith.subf %44, %43 : vector<4x8x128xf32>
    %46 = arith.addf %0, %45 : vector<4x8x128xf32>
    %cst_9 = arith.constant dense<0xFF800000> : vector<4x8xf32>
    %47 = vector.multi_reduction <maximumf>, %46, %cst_9 [2] : vector<4x8x128xf32> to vector<4x8xf32>
    %48 = vector.shape_cast %47 : vector<4x8xf32> to vector<4x8x1xf32>
    %49 = tpu.iota {dimensions = array<i32: 2>} : vector<4x8x128xi32>
    %50 = vector.broadcast %48 : vector<4x8x1xf32> to vector<4x8x128xf32>
    %51 = arith.cmpf oeq, %46, %50 : vector<4x8x128xf32>
    %c128_i32_10 = arith.constant 128 : i32
    %52 = vector.broadcast %c128_i32_10 : i32 to vector<4x8x128xi32>
    %53 = arith.select %51, %49, %52 : vector<4x8x128xi1>, vector<4x8x128xi32>
    %cst_11 = arith.constant dense<2147483647> : vector<4x8xi32>
    %54 = vector.multi_reduction <minsi>, %53, %cst_11 [2] : vector<4x8x128xi32> to vector<4x8xi32>
    %55 = vector.shape_cast %54 : vector<4x8xi32> to vector<4x8x1xi32>
    %56 = vector.broadcast %55 : vector<4x8x1xi32> to vector<4x8x128xi32>
    %57 = arith.cmpi eq, %49, %56 : vector<4x8x128xi32>
    %58 = arith.extui %57 : vector<4x8x128xi1> to vector<4x8x128xi32>
    %59 = arith.sitofp %58 : vector<4x8x128xi32> to vector<4x8x128xf32>
    %60 = arith.truncf %59 : vector<4x8x128xf32> to vector<4x8x128xbf16>
    %c0_12 = arith.constant 0 : index
    %c0_13 = arith.constant 0 : index
    %c0_14 = arith.constant 0 : index
    %61 = vector.load %arg4[%c0_12, %c0_13, %c0_14] : memref<4x8x128xbf16, #tpu.memory_space<vmem>>, vector<4x8x128xbf16>
    tpu.vector_store %arg4[%c0_12, %c0_13, %c0_14], %60 {strides = array<i32>} : memref<4x8x128xbf16, #tpu.memory_space<vmem>>, vector<4x8x128xbf16>,
    %62 = arith.sitofp %55 : vector<4x8x1xi32> to vector<4x8x1xf32>
    %c0_15 = arith.constant 0 : index
    %c0_16 = arith.constant 0 : index
    %c0_17 = arith.constant 0 : index
    %63 = vector.load %arg5[%c0_15, %c0_16, %c0_17] : memref<4x8x1xf32, #tpu.memory_space<vmem>>, vector<4x8x1xf32>
    tpu.vector_store %arg5[%c0_15, %c0_16, %c0_17], %62 {strides = array<i32>} : memref<4x8x1xf32, #tpu.memory_space<vmem>>, vector<4x8x1xf32>,
    return
  }
  func.func @transform_0(%arg0: i32, %arg1: i32, %arg2: memref<1xi32, #tpu.memory_space<smem>>) -> (i32, i32, i32) {
    %c0_i32 = arith.constant 0 : i32
    %c0_i32_0 = arith.constant 0 : i32
    return %arg0, %arg1, %c0_i32 : i32, i32, i32
  }
  func.func @transform_1(%arg0: i32, %arg1: i32, %arg2: memref<1xi32, #tpu.memory_space<smem>>) -> (i32, i32, i32) {
    %c0_i32 = arith.constant 0 : i32
    %c0_i32_0 = arith.constant 0 : i32
    return %arg0, %arg1, %c0_i32 : i32, i32, i32
  }
  func.func @transform_2(%arg0: i32, %arg1: i32, %arg2: memref<1xi32, #tpu.memory_space<smem>>) -> (i32, i32, i32) {
    %c0_i32 = arith.constant 0 : i32
    %c0_i32_0 = arith.constant 0 : i32
    return %arg0, %arg1, %c0_i32 : i32, i32, i32
  }
}

</mosaic_0001>

<bundles_post_ra>
// kernel: tpu_custom_call.1
= control target key start
LH: loop header
LB: loop body
LE: loop exit
PB: predicated region body
PF: predicated region fallthrough
CT: control target
= control target key end

     0   :  { %10 = vsyncpa [#allocation5], 0  ;;  %s440_s0 = inlined_call_operand.<no memory space> [shape: s32[1], index: 0, kind: input, shape index: {}]   ;;  %s441_s1 = inlined_call_operand.hbm [shape: f32[4,8,128], index: 1, kind: input, shape index: {}]   ;;  %s442_s2 = inlined_call_operand.hbm [shape: bf16[4,8,128], index: 2, kind: output, shape index: {0}]   ;;  %s443_s3 = inlined_call_operand.vmem [shape: f32[4,8,1], index: 3, kind: output, shape index: {1}]  }
   0x1   :  { %11 = vsyncpa [#allocation6], 0  ;;  %s16_s14 = sshll.u32 %s441_s1, 4  ;;  %s374_s15 = smov [#allocation4]   ;;  %s17_s14 = int_to_ptr.hbm [resolvable:$true] %s16_s14 }
   0x2   :  { %s18_s16 = sshll.u32 %s374_s15, 4  ;;  %s375_s17 = smov 128   ;;  %s19_s16 = int_to_ptr.vmem [resolvable:$true] %s18_s16 }
   0x3   :  { %s376_s18 = smov 8  }
   0x4   :  { %24 = dma.hbm_to_vmem [thread:$0]  %s17_s14, 512, %s19_s16, [#allocation5], %s375_s17, %s375_s17, %s376_s18  }
   0x5   :  { %370 = dma.done.wait [#allocation5], 512  }
   0x6   :  { %371 = vsyncadd [#allocation5], 4294966784  ;;  %v38_v0 = vlaneseq  ;;  %s62_s21 = smul.u32 2654435769, %s440_s0  ;;  %vm260_vm8 = vcmask 7168   ;;  %s377_s24 = smov [#allocation7]  }
   0x7   :  { %s269_s25 = sshll.u32 %s377_s24, 4  ;;  %s271_s28 = sshll.u32 %s442_s2, 4  ;;  %s270_s25 = int_to_ptr.vmem [resolvable:$true] %s269_s25  ;;  %s272_s28 = int_to_ptr.hbm [resolvable:$true] %s271_s28 }
   0x8   :  { %v39_v1 = vshrl.u32 %v38_v0, 7  ;;  %v407_v2 = vand.u32 127, %v38_v0  ;;  %v63_v7 = vstv %s62_s21  ;;  %s379_s5 = smov 64   ;;  %s380_s6 = smov 4  }
   0xa   :  { %v53_v3 = vmul.u32 128, %v39_v1  ;;  %v51_v4 = vadd.s32 16, %v39_v1  ;;  %v50_v5 = vadd.s32 8, %v39_v1  ;;  %v52_v6 = vadd.s32 24, %v39_v1 }
   0xc   :  { %v57_v8 = vadd.s32 %v53_v3, %v407_v2  ;;  %v55_v9 = vmul.u32 128, %v51_v4  ;;  %v54_v10 = vmul.u32 128, %v50_v5  ;;  %v56_v11 = vmul.u32 128, %v52_v6 }
   0xe   :  { %v64_v12 = vxor.u32 %v63_v7, %v57_v8  ;;  %v59_v13 = vadd.s32 %v55_v9, %v407_v2  ;;  %v58_v14 = vadd.s32 %v54_v10, %v407_v2  ;;  %v60_v15 = vadd.s32 %v56_v11, %v407_v2 }
  0x10   :  { %v68_v16 = vshrl.u32 %v64_v12, 16  ;;  %v66_v17 = vxor.u32 %v63_v7, %v59_v13  ;;  %v65_v18 = vxor.u32 %v63_v7, %v58_v14  ;;  %v67_v19 = vxor.u32 %v63_v7, %v60_v15 }
  0x12   :  { %v72_v20 = vxor.u32 %v68_v16, %v64_v12  ;;  %v70_v21 = vshrl.u32 %v66_v17, 16  ;;  %v69_v22 = vshrl.u32 %v65_v18, 16  ;;  %v71_v23 = vshrl.u32 %v67_v19, 16 }
  0x14   :  { %v76_v24 = vmul.u32 2146121005, %v72_v20  ;;  %v74_v25 = vxor.u32 %v70_v21, %v66_v17  ;;  %v73_v26 = vxor.u32 %v69_v22, %v65_v18  ;;  %v75_v27 = vxor.u32 %v71_v23, %v67_v19 }
  0x16   :  { %v80_v28 = vshrl.u32 %v76_v24, 15  ;;  %v78_v29 = vmul.u32 2146121005, %v74_v25  ;;  %v77_v30 = vmul.u32 2146121005, %v73_v26 }
  0x17   :  { %v79_v31 = vmul.u32 2146121005, %v75_v27 }
  0x18   :  { %v84_v32 = vxor.u32 %v80_v28, %v76_v24  ;;  %v82_v33 = vshrl.u32 %v78_v29, 15  ;;  %v81_v34 = vshrl.u32 %v77_v30, 15 }
  0x19   :  { %v83_v35 = vshrl.u32 %v79_v31, 15 }
  0x1a   :  { %v88_v36 = vmul.u32 2221713035, %v84_v32  ;;  %v86_v37 = vxor.u32 %v82_v33, %v78_v29  ;;  %v85_v38 = vxor.u32 %v81_v34, %v77_v30 }
  0x1b   :  { %v87_v39 = vxor.u32 %v83_v35, %v79_v31 }
  0x1c   :  { %v92_v40 = vshrl.u32 %v88_v36, 16  ;;  %v90_v41 = vmul.u32 2221713035, %v86_v37  ;;  %v89_v42 = vmul.u32 2221713035, %v85_v38 }
  0x1d   :  { %v91_v43 = vmul.u32 2221713035, %v87_v39  ;;  %v29_v39 = vld [vmem:[#allocation4] sm:$0xff] }
  0x1e   :  { %v96_v44 = vxor.u32 %v92_v40, %v88_v36  ;;  %v94_v45 = vshrl.u32 %v90_v41, 16  ;;  %v93_v46 = vshrl.u32 %v89_v42, 16 }
  0x1f   :  { %v95_v47 = vshrl.u32 %v91_v43, 16 }
  0x20   :  { %v100_v48 = vshrl.u32 %v96_v44, 8  ;;  %v98_v49 = vxor.u32 %v94_v45, %v90_v41  ;;  %v97_v50 = vxor.u32 %v93_v46, %v89_v42  ;;  %v31_v44 = vld [vmem:[#allocation4 + $0x10] sm:$0xff] }
  0x21   :  { %v99_v51 = vxor.u32 %v95_v47, %v91_v43 }
  0x22   :  { %v104_v52 = vshrl.u32 %v100_v48, 16  ;;  %v105_v53 = vand.u32 65535, %v100_v48  ;;  %v102_v54 = vshrl.u32 %v98_v49, 8  ;;  %v101_v55 = vshrl.u32 %v97_v50, 8 }
  0x23   :  { %v103_v56 = vshrl.u32 %v99_v51, 8  ;;  %v30_v51 = vld [vmem:[#allocation4 + $0x8] sm:$0xff] }
  0x24   :  { %v106_v57 = vcvt.s32.f32 %v104_v52  ;;  %v108_v58 = vcvt.s32.f32 %v105_v53  ;;  %v116_v59 = vshrl.u32 %v102_v54, 16  ;;  %v117_v60 = vand.u32 65535, %v102_v54  ;;  %v32_v53 = vld [vmem:[#allocation4 + $0x18] sm:$0xff] }
  0x25   :  { %v110_v61 = vshrl.u32 %v101_v55, 16  ;;  %v111_v62 = vand.u32 65535, %v101_v55  ;;  %v122_v63 = vshrl.u32 %v103_v56, 16  ;;  %v123_v0 = vand.u32 65535, %v103_v56 }
  0x26   :  { %v107_v1 = vmul.f32 65536.0, %v106_v57  ;;  %v118_v3 = vcvt.s32.f32 %v116_v59  ;;  %v120_v4 = vcvt.s32.f32 %v117_v60 }
  0x27   :  { %v112_v5 = vcvt.s32.f32 %v110_v61  ;;  %v114_v6 = vcvt.s32.f32 %v111_v62  ;;  %v124_v7 = vcvt.s32.f32 %v122_v63  ;;  %v126_v8 = vcvt.s32.f32 %v123_v0 }
  0x28   :  { %v109_v9 = vadd.f32 %v108_v58, %v107_v1  ;;  %v119_v10 = vmul.f32 65536.0, %v118_v3 }
  0x29   :  { %v113_v11 = vmul.f32 65536.0, %v112_v5  ;;  %v125_v12 = vmul.f32 65536.0, %v124_v7 }
  0x2a   :  { %v128_v13 = vadd.f32 0.5, %v109_v9  ;;  %v121_v14 = vadd.f32 %v120_v4, %v119_v10 }
  0x2b   :  { %v115_v15 = vadd.f32 %v114_v6, %v113_v11  ;;  %v127_v16 = vadd.f32 %v126_v8, %v125_v12 }
  0x2c   :  { %v132_v17 = vmul.f32 5.9604645e-08, %v128_v13  ;;  %v130_v18 = vadd.f32 0.5, %v121_v14 }
  0x2d   :  { %v129_v19 = vadd.f32 0.5, %v115_v15  ;;  %v131_v20 = vadd.f32 0.5, %v127_v16 }
  0x2e   :  { %306 = vlog2.f32 %v132_v17  ;;  %v134_v21 = vmul.f32 5.9604645e-08, %v130_v18 }
  0x2f   :  { %v133_v22 = vmul.f32 5.9604645e-08, %v129_v19  ;;  %v135_v23 = vmul.f32 5.9604645e-08, %v131_v20 }
  0x30   :  { %308 = vlog2.f32 %v134_v21 }
  0x31   :  { %310 = vlog2.f32 %v133_v22 }
  0x32   :  { %312 = vlog2.f32 %v135_v23 }
  0x34   :  { %v307_v24 = vpop.eup %306 }
  0x35   :  { %v137_v25 = vmul.f32 0.6931472, %v307_v24 }
  0x36   :  { %v309_v26 = vpop.eup %308 }
  0x37   :  { %v311_v27 = vpop.eup %310  ;;  %v144_v28 = vsub.f32 0.0, %v137_v25  ;;  %v141_v29 = vmul.f32 0.6931472, %v309_v26 }
  0x38   :  { %v313_v30 = vpop.eup %312  ;;  %v139_v31 = vmul.f32 0.6931472, %v311_v27 }
  0x39   :  { %314 = vlog2.f32 %v144_v28  ;;  %v146_v32 = vsub.f32 0.0, %v141_v29  ;;  %v143_v33 = vmul.f32 0.6931472, %v313_v30 }
  0x3a   :  { %v145_v34 = vsub.f32 0.0, %v139_v31 }
  0x3b   :  { %316 = vlog2.f32 %v146_v32  ;;  %v147_v35 = vsub.f32 0.0, %v143_v33 }
  0x3c   :  { %318 = vlog2.f32 %v145_v34 }
  0x3d   :  { %320 = vlog2.f32 %v147_v35 }
  0x3f   :  { %v315_v36 = vpop.eup %314 }
  0x40   :  { %v149_v37 = vmul.f32 0.6931472, %v315_v36 }
  0x41   :  { %v317_v38 = vpop.eup %316 }
  0x42   :  { %v319_v40 = vpop.eup %318  ;;  %v156_v41 = vsub.f32 0.0, %v149_v37  ;;  %v153_v42 = vmul.f32 0.6931472, %v317_v38 }
  0x43   :  { %v321_v43 = vpop.eup %320  ;;  %v151_v45 = vmul.f32 0.6931472, %v319_v40 }
  0x44   :  { %v160_v46 = vadd.f32 %v156_v41, %v29_v39  ;;  %v158_v47 = vsub.f32 0.0, %v153_v42  ;;  %v155_v48 = vmul.f32 0.6931472, %v321_v43 }
  0x45   :  { %v157_v50 = vsub.f32 0.0, %v151_v45 }
  0x46   :  { %164 = vmax.xlane.f32.xlu0 %v160_v46  ;;  %v162_v49 = vadd.f32 %v158_v47, %v31_v44  ;;  %v159_v52 = vsub.f32 0.0, %v155_v48  ;;  %v378_v48 = vmov 0.0  }
  0x47   :  { %v161_v54 = vadd.f32 %v157_v50, %v30_v51 }
  0x48   :  { %168 = vmax.xlane.f32.xlu1 %v162_v49  ;;  %v163_v55 = vadd.f32 %v159_v52, %v32_v53 }
  0x4e   :  { %166 = vmax.xlane.f32.xlu0 %v161_v54 }
  0x50   :  { %170 = vmax.xlane.f32.xlu1 %v163_v55 }
  0xb9   :  { %v165_v56 = vpop.xlane.xlu0 %164 }
  0xba   :  { %vm172_vm0 = vcmp.eq.f32.partialorder %v160_v46, %v165_v56 }
  0xbb   :  { %v176_v57 = vsel %vm172_vm0, %v407_v2, 128  ;;  %v169_v58 = vpop.xlane.xlu1 %168 }
  0xbc   :  { %vm174_vm1 = vcmp.eq.f32.partialorder %v162_v49, %v169_v58  ;;  %v181_v59 = vshra.s32 %v176_v57, 16  ;;  %v180_v9 = vand.u32 65535, %v176_v57 }
  0xbd   :  { %v178_v60 = vsel %vm174_vm1, %v407_v2, 128 }
  0xbe   :  { %v183_v61 = vcvt.s32.f32 %v181_v59  ;;  %v209_v62 = vshra.s32 %v178_v60, 16  ;;  %v208_v10 = vand.u32 65535, %v178_v60  ;;  %v182_v12 = vcvt.s32.f32 %v180_v9 }
  0xc0   :  { %184 = vmin.xlane.f32.xlu2 %v183_v61  ;;  %v211_v63 = vcvt.s32.f32 %v209_v62  ;;  %v210_v15 = vcvt.s32.f32 %v208_v10 }
  0xc1   :  { %v167_v0 = vpop.xlane.xlu0 %166 }
  0xc2   :  { %vm173_vm2 = vcmp.eq.f32.partialorder %v161_v54, %v167_v0  ;;  %212 = vmin.xlane.f32.xlu0 %v211_v63 }
  0xc3   :  { %v177_v1 = vsel %vm173_vm2, %v407_v2, 128  ;;  %v171_v3 = vpop.xlane.xlu1 %170 }
  0xc4   :  { %vm175_vm3 = vcmp.eq.f32.partialorder %v163_v55, %v171_v3  ;;  %v195_v4 = vshra.s32 %v177_v1, 16  ;;  %v194_v16 = vand.u32 65535, %v177_v1 }
  0xc5   :  { %v179_v5 = vsel %vm175_vm3, %v407_v2, 128 }
  0xc6   :  { %v197_v6 = vcvt.s32.f32 %v195_v4  ;;  %v223_v7 = vshra.s32 %v179_v5, 16  ;;  %v222_v18 = vand.u32 65535, %v179_v5  ;;  %v196_v20 = vcvt.s32.f32 %v194_v16 }
  0xc8   :  { %198 = vmin.xlane.f32.xlu2 %v197_v6  ;;  %v225_v8 = vcvt.s32.f32 %v223_v7  ;;  %v224_v23 = vcvt.s32.f32 %v222_v18 }
  0xca   :  { %226 = vmin.xlane.f32.xlu1 %v225_v8 }
 0x133   :  { %v185_v11 = vpop.xlane.xlu2 %184 }
 0x134   :  { %vm186_vm4 = vcmp.eq.f32.partialorder %v183_v61, %v185_v11  ;;  %v191_v25 = vcvt.f32.s32 %v185_v11 }
 0x135   :  { %v213_v13 = vpop.xlane.xlu0 %212  ;;  %v187_v14 = vsel %vm186_vm4, %v182_v12, inf }
 0x136   :  { %188 = vmin.xlane.f32.xlu2 %v187_v14  ;;  %vm214_vm5 = vcmp.eq.f32.partialorder %v211_v63, %v213_v13  ;;  %v219_v26 = vcvt.f32.s32 %v213_v13  ;;  %v192_v28 = vshll.u32 %v191_v25, 16 }
 0x137   :  { %v215_v17 = vsel %vm214_vm5, %v210_v15, inf }
 0x138   :  { %216 = vmin.xlane.f32.xlu1 %v215_v17  ;;  %v220_v31 = vshll.u32 %v219_v26, 16 }
 0x13b   :  { %v199_v19 = vpop.xlane.xlu2 %198 }
 0x13c   :  { %vm200_vm6 = vcmp.eq.f32.partialorder %v197_v6, %v199_v19  ;;  %v205_v34 = vcvt.f32.s32 %v199_v19 }
 0x13d   :  { %v227_v21 = vpop.xlane.xlu1 %226  ;;  %v201_v22 = vsel %vm200_vm6, %v196_v20, inf }
 0x13e   :  { %202 = vmin.xlane.f32.xlu0 %v201_v22  ;;  %vm228_vm7 = vcmp.eq.f32.partialorder %v225_v8, %v227_v21  ;;  %v233_v37 = vcvt.f32.s32 %v227_v21  ;;  %v206_v40 = vshll.u32 %v205_v34, 16 }
 0x13f   :  { %v229_v24 = vsel %vm228_vm7, %v224_v23, inf }
 0x140   :  { %230 = vmin.xlane.f32.xlu2 %v229_v24  ;;  %v234_v43 = vshll.u32 %v233_v37, 16 }
 0x1a9   :  { %v189_v27 = vpop.xlane.xlu2 %188 }
 0x1aa   :  { %v190_v29 = vcvt.f32.s32 %v189_v27 }
 0x1ab   :  { %v217_v30 = vpop.xlane.xlu1 %216 }
 0x1ac   :  { %v193_v32 = vadd.s32 %v192_v28, %v190_v29  ;;  %v218_v33 = vcvt.f32.s32 %v217_v30 }
 0x1ae   :  { %v256_v35 = vcvt.s32.f32 %v193_v32  ;;  %v221_v36 = vadd.s32 %v220_v31, %v218_v33  ;;  %vm236_vm9 = vcmp.eq.s32.totalorder %v407_v2, %v193_v32 }
 0x1af   :  { %v288_v49 = vsel %vm236_vm9, 1.0, %v378_v48 }
 0x1b0   :  { %261 = vst.msk [vmem:[%s443_s3] sm:$0xff] %vm260_vm8, %v256_v35  ;;  %v258_v38 = vcvt.s32.f32 %v221_v36  ;;  %vm238_vm10 = vcmp.eq.s32.totalorder %v407_v2, %v221_v36 }
 0x1b1   :  { %v203_v39 = vpop.xlane.xlu0 %202  ;;  %v290_v53 = vsel %vm238_vm10, 1.0, %v378_v48 }
 0x1b2   :  { %263 = vst.msk [vmem:[%s443_s3 + $0x10] sm:$0xff] %vm260_vm8, %v258_v38  ;;  %v204_v41 = vcvt.f32.s32 %v203_v39 }
 0x1b3   :  { %v231_v42 = vpop.xlane.xlu2 %230 }
 0x1b4   :  { %v207_v44 = vadd.s32 %v206_v40, %v204_v41  ;;  %v232_v45 = vcvt.f32.s32 %v231_v42 }
 0x1b6   :  { %vm237_vm11 = vcmp.eq.s32.totalorder %v407_v2, %v207_v44  ;;  %v257_v46 = vcvt.s32.f32 %v207_v44  ;;  %v235_v47 = vadd.s32 %v234_v43, %v232_v45 }
 0x1b7   :  { %v289_v50 = vsel %vm237_vm11, 1.0, %v378_v48 }
 0x1b8   :  { %v293_v51 = vpack.c.bf16 %v289_v50, %v288_v49  ;;  %262 = vst.msk [vmem:[%s443_s3 + $0x8] sm:$0xff] %vm260_vm8, %v257_v46  ;;  %vm239_vm12 = vcmp.eq.s32.totalorder %v407_v2, %v235_v47  ;;  %v259_v52 = vcvt.s32.f32 %v235_v47 }
 0x1b9   :  { %v291_v54 = vsel %vm239_vm12, 1.0, %v378_v48 }
 0x1ba   :  { %294 = vst [vmem:[#allocation7] sm:$0xff] %v293_v51   ;;  %v296_v55 = vpack.c.bf16 %v291_v54, %v290_v53 }
 0x1bb   :  { %264 = vst.msk [vmem:[%s443_s3 + $0x18] sm:$0xff] %vm260_vm8, %v259_v52 }
 0x1bc   :  { %298 = vst [vmem:[#allocation7 + $0x8] sm:$0xff] %v296_v55  }
 0x1bd   :  { %277 = dma.vmem_to_hbm [thread:$0]  %s270_s25, 256, %s272_s28, [#allocation6], %s379_s5, %s379_s5, %s380_s6  }
 0x1be   :  { %372 = dma.done.wait [#allocation6], 256  }
 0x1bf   :  { %373 = vsyncadd [#allocation6], 4294967040 }
 0x1c0   :  { %286 = vsyncpa [#allocation5], 1 }
 0x1c1   :  { %287 = vsyncpa [#allocation6], 1 }

</bundles_post_ra>
